<compile_context>
chip_gen: v6e
topology: v6e:2x2x1
jax: 0.10.0
libtpu: 0.0.40
codegen_flags: <defaults>
</compile_context>

<pallas_src>
from functools import partial

import jax
import jax.numpy as jnp
from jax import lax
from jax.experimental import pallas as pl
from jax.experimental.pallas import tpu as pltpu

_MIB = 1024 * 1024
_TM_CANDIDATES = (512, 384, 256, 128)   # multiples of 128, capped at 512 rows


# --------------------------------------------------------------------------- #
# Kernel
# --------------------------------------------------------------------------- #
def _ce_body(pred_ref, slab_ref, out_ref, *, n_rows: int):
    """One (TM, C) row block -> partial sum of (lse_i - pred[i, i])."""
    i = pl.program_id(0)
    p = pred_ref[...]                                   # (TM, C), native dtype
    tm, _ = p.shape

    # ---- numerically-stable per-row logsumexp (f32 accumulation) ---------- #
    row_max = jnp.max(p, axis=-1, keepdims=True)        # native dtype, exact
    row_max_f32 = row_max.astype(jnp.float32)
    shifted = p.astype(jnp.float32) - row_max_f32       # exact f32 subtract
    sum_exp = jnp.sum(jnp.exp(shifted), axis=-1, keepdims=True)
    lse = row_max_f32 + jnp.log(sum_exp)                # (TM, 1) f32

    # ---- diagonal from the (TM, TM) slab ----------------------------------- #
    # slab columns start at global column i*TM, so the global diagonal element
    # of local row r sits at local column r in the slab.
    blk = slab_ref[...]                                 # (TM, TM) (or (N, N))
    bm, bc = blk.shape
    lane_ids = lax.broadcasted_iota(jnp.int32, (bm, bc), 1)
    row_ids = lax.broadcasted_iota(jnp.int32, (bm, 1), 0)
    diag = jnp.sum(
        jnp.where(lane_ids == row_ids, blk.astype(jnp.float32), 0.0),
        axis=-1, keepdims=True)                          # (TM, 1) f32

    per_row = lse - diag                                 # (TM, 1)

    # ---- mask rows past N in the (possibly partial) last tile -------------- #
    if n_rows % tm != 0:
        gl_row = lax.broadcasted_iota(jnp.int32, (tm, 1), 0) + i * tm
        per_row = jnp.where(gl_row < n_rows, per_row, 0.0)

    # Lane-dense (1, 8, 128) partial; wrapper reads element [i, 0, 0].
    out_ref[...] = jnp.full(out_ref.shape, jnp.sum(per_row), dtype=jnp.float32)


def _ce_kernel_single(pred_ref, out_ref, *, n_rows: int):
    # Single full block: the tile IS the diagonal slab.
    _ce_body(pred_ref, pred_ref, out_ref, n_rows=n_rows)


def _ce_kernel_tiled(pred_ref, slab_ref, out_ref, *, n_rows: int):
    _ce_body(pred_ref, slab_ref, out_ref, n_rows=n_rows)


# --------------------------------------------------------------------------- #
# Tiling / VMEM planning
# --------------------------------------------------------------------------- #
def _vmem_plan():
    """(vmem_limit_bytes, tile_budget_bytes), generation-aware."""
    cap = 0
    try:
        cap = int(getattr(pltpu.get_tpu_info(), "vmem_capacity_bytes", 0) or 0)
    except Exception:
        cap = 0
    if cap >= 96 * _MIB:               # v5e / v6e: 128 MiB physical VMEM
        return 64 * _MIB, 48 * _MIB
    # v7x (64 MiB physical) or unknown: stay conservative.
    return 40 * _MIB, 24 * _MIB


def _pick_tile_rows(n: int, c: int, itemsize: int, budget: int) -> int:
    """Row-tile size: full matrix for small N, else largest 128-multiple <=512."""
    if n <= 512:
        return n                        # single full block (block dims == array dims)
    for tm in _TM_CANDIDATES:
        vmem = (2 * tm * c * itemsize       # main tile, double-buffered
                + 2 * tm * tm * itemsize    # diag slab, double-buffered
                + 2 * tm * c * 4            # f32 (p - max) / exp intermediates
                + 2 * tm * tm * 4)          # slab iota/select intermediates
        if vmem <= budget:
            return tm
    # TODO(synk): C so large that even TM=128 overshoots the budget; rely on
    # vmem_limit headroom rather than dropping below 128-row lane alignment.
    return 128


# --------------------------------------------------------------------------- #
# Wrapper
# --------------------------------------------------------------------------- #
def loss_correlation(pred: jax.Array) -> jax.Array:
    """pred: (num_class, num_class) logits (any float dtype). Returns f32 scalar."""
    n, c = pred.shape
    assert n == c, "LossCorrelation expects pred of shape (num_class, num_class)"

    itemsize = jnp.dtype(pred.dtype).itemsize
    vmem_limit, budget = _vmem_plan()
    tm = _pick_tile_rows(n, c, itemsize, budget)
    num_tiles = pl.cdiv(n, tm)
    single = num_tiles == 1

    main_spec = pl.BlockSpec((tm, c), lambda i: (i, 0))
    out_spec = pl.BlockSpec((1, 8, 128), lambda i: (i, 0, 0))

    if single:
        kernel = partial(_ce_kernel_single, n_rows=n)
        in_specs = [main_spec]
        operands = (pred,)
        slab_bytes = 0
    else:
        kernel = partial(_ce_kernel_tiled, n_rows=n)
        in_specs = [main_spec, pl.BlockSpec((tm, tm), lambda i: (i, i))]
        operands = (pred, pred)                 # second view feeds the diag slab
        slab_bytes = n * tm * itemsize

    partials = pl.pallas_call(
        kernel,
        out_shape=jax.ShapeDtypeStruct((num_tiles, 8, 128), jnp.float32),
        grid=(num_tiles,),
        in_specs=in_specs,
        out_specs=out_spec,
        compiler_params=pltpu.CompilerParams(
            dimension_semantics=("parallel",),
            vmem_limit_bytes=vmem_limit,
        ),
        cost_estimate=pl.CostEstimate(
            flops=3 * n * c + 3 * n * tm,
            transcendentals=n * c + n,
            bytes_accessed=n * c * itemsize + slab_bytes + num_tiles * 8 * 128 * 4,
        ),
    )(*operands)

    # Tiny final reduction in plain XLA: mean over rows.
    return jnp.sum(partials[:, 0, 0]) / jnp.float32(n)


def _reference(pred: jax.Array) -> jax.Array:
    # Pure-JAX reference of F.cross_entropy(pred, arange(N)).
    p = pred.astype(jnp.float32)
    lse = jax.scipy.special.logsumexp(p, axis=-1)
    return jnp.mean(lse - jnp.diagonal(p))


# --------------------------------------------------------------------------- #
# Demo / self-test
# --------------------------------------------------------------------------- #
if __name__ == "__main__":
    key = jax.random.PRNGKey(0)
    k1, k2 = jax.random.split(key)

    # 1) Small single-tile case (odd size -> full-dims block specs).
    n1 = 200
    pred1 = jax.random.normal(k1, (n1, n1), dtype=jnp.float32)
    out1 = jax.block_until_ready(loss_correlation(pred1))
    ref1 = jax.block_until_ready(_reference(pred1))
    assert jnp.allclose(out1, ref1, atol=1e-4, rtol=1e-5), (out1, ref1)

    # 2) Multi-tile case: TM=512, 2 row tiles, partial last tile (row masking)
    #    and the (TM, TM) diagonal-slab BlockSpec path.
    n2 = 640
    pred2 = jax.random.normal(k2, (n2, n2), dtype=jnp.float32)
    out2 = jax.block_until_ready(loss_correlation(pred2))
    ref2 = jax.block_until_ready(_reference(pred2))
    assert jnp.allclose(out2, ref2, atol=1e-4, rtol=1e-5), (out2, ref2)

    # 3) bf16 input fed natively (no wrapper cast); kernel widens to f32 in-tile.
    pred2_bf16 = pred2.astype(jnp.bfloat16)
    out3 = jax.block_until_ready(loss_correlation(pred2_bf16))
    ref3 = jax.block_until_ready(_reference(pred2_bf16))
    assert jnp.allclose(out3, ref3, atol=1e-3, rtol=1e-4), (out3, ref3)

    print("KERNEL_OK")
</pallas_src>

<mosaic_0001>
module attributes {stable_mosaic.version = 11 : i64} {
  func.func @_ce_kernel_single(%arg0: i32, %arg1: memref<200x200xf32, #tpu.memory_space<vmem>>, %arg2: memref<1x8x128xf32, #tpu.memory_space<vmem>>) attributes {dimension_semantics = [#tpu.dimension_semantics<parallel>], iteration_bounds = array<i64: 1>, scalar_prefetch = 0 : i64, scratch_operands = 0 : i64, tpu.core_type = #tpu.core_type<tc>, window_params = [{transform_indices = @transform_0, window_bounds = array<i64: 200, 200>}, {transform_indices = @transform_1, window_bounds = array<i64: 1, 8, 128>}]} {
    %c0 = arith.constant 0 : index
    %c0_0 = arith.constant 0 : index
    %0 = vector.load %arg1[%c0, %c0_0] : memref<200x200xf32, #tpu.memory_space<vmem>>, vector<200x200xf32>
    %cst = arith.constant dense<0xFF800000> : vector<200xf32>
    %1 = vector.multi_reduction <maximumf>, %0, %cst [1] : vector<200x200xf32> to vector<200xf32>
    %2 = vector.shape_cast %1 : vector<200xf32> to vector<200x1xf32>
    %3 = vector.broadcast %2 : vector<200x1xf32> to vector<200x200xf32>
    %4 = arith.subf %0, %3 : vector<200x200xf32>
    %5 = math.exp %4 : vector<200x200xf32>
    %cst_1 = arith.constant dense<0.000000e+00> : vector<200xf32>
    %6 = vector.multi_reduction <add>, %5, %cst_1 [1] : vector<200x200xf32> to vector<200xf32>
    %7 = vector.shape_cast %6 : vector<200xf32> to vector<200x1xf32>
    %8 = math.log %7 : vector<200x1xf32>
    %9 = arith.addf %2, %8 : vector<200x1xf32>
    %c0_2 = arith.constant 0 : index
    %c0_3 = arith.constant 0 : index
    %10 = vector.load %arg1[%c0_2, %c0_3] : memref<200x200xf32, #tpu.memory_space<vmem>>, vector<200x200xf32>
    %11 = tpu.iota {dimensions = array<i32: 1>} : vector<200x200xi32>
    %12 = tpu.iota {dimensions = array<i32: 0>} : vector<200x1xi32>
    %13 = vector.broadcast %12 : vector<200x1xi32> to vector<200x200xi32>
    %14 = arith.cmpi eq, %11, %13 : vector<200x200xi32>
    %cst_4 = arith.constant 0.000000e+00 : f32
    %15 = vector.broadcast %cst_4 : f32 to vector<200x200xf32>
    %16 = arith.select %14, %10, %15 : vector<200x200xi1>, vector<200x200xf32>
    %cst_5 = arith.constant dense<0.000000e+00> : vector<200xf32>
    %17 = vector.multi_reduction <add>, %16, %cst_5 [1] : vector<200x200xf32> to vector<200xf32>
    %18 = vector.shape_cast %17 : vector<200xf32> to vector<200x1xf32>
    %19 = arith.subf %9, %18 : vector<200x1xf32>
    %20 = vector.shape_cast %19 : vector<200x1xf32> to vector<1x200x1xf32>
    %cst_6 = arith.constant dense<0.000000e+00> : vector<1xf32>
    %21 = vector.multi_reduction <add>, %20, %cst_6 [1, 2] : vector<1x200x1xf32> to vector<1xf32>
    %22 = vector.shape_cast %21 : vector<1xf32> to vector<1x1x1xf32>
    %23 = vector.extract %22[0, 0, 0] : f32 from vector<1x1x1xf32>
    %24 = vector.broadcast %23 : f32 to vector<1x8x128xf32>
    %c0_7 = arith.constant 0 : index
    %c0_8 = arith.constant 0 : index
    %c0_9 = arith.constant 0 : index
    %25 = vector.load %arg2[%c0_7, %c0_8, %c0_9] : memref<1x8x128xf32, #tpu.memory_space<vmem>>, vector<1x8x128xf32>
    tpu.vector_store %arg2[%c0_7, %c0_8, %c0_9], %24 {strides = array<i32>} : memref<1x8x128xf32, #tpu.memory_space<vmem>>, vector<1x8x128xf32>,
    return
  }
  func.func @transform_0(%arg0: i32) -> (i32, i32) {
    %c0_i32 = arith.constant 0 : i32
    %c0_i32_0 = arith.constant 0 : i32
    return %arg0, %c0_i32 : i32, i32
  }
  func.func @transform_1(%arg0: i32) -> (i32, i32, i32) {
    %c0_i32 = arith.constant 0 : i32
    %c0_i32_0 = arith.constant 0 : i32
    %c0_i32_1 = arith.constant 0 : i32
    return %arg0, %c0_i32, %c0_i32_0 : i32, i32, i32
  }
}

</mosaic_0001>

<bundles_post_ra>
// kernel: tpu_custom_call.1
= control target key start
LH: loop header
LB: loop body
LE: loop exit
PB: predicated region body
PF: predicated region fallthrough
CT: control target
= control target key end

     0   :  { %6 = vsyncpa [#allocation3], 0  ;;  %s1567_s0 = inlined_call_operand.hbm [shape: f32[200,200], index: 0, kind: input, shape index: {}]   ;;  %s1568_s1 = inlined_call_operand.hbm [shape: f32[1,8,128], index: 1, kind: output, shape index: {}]  }
   0x1   :  { %7 = vsyncpa [#allocation4], 0  ;;  %s1029_s6 = smov [#allocation2]  }
   0x2   :  { %s13_s7 = sshll.u32 %s1029_s6, 4  ;;  %s14_s7 = int_to_ptr.vmem [resolvable:$true] %s13_s7 }
   0x3   :  { %s993_s8 = scalar_lea.vmem %s14_s7, 6400  ;;  %p998_p1 = scmp.lt.s32.totalorder %s14_s7, %s14_s7 }
   0x4   :  { %p994_p0 = scmp.ne.s32.totalorder %s14_s7, %s993_s8  ;;  %p999_p2 = scmp.lt.s32.totalorder %s993_s8, %s993_s8 }
   0x6   :  { %p1000_p3 = por %p999_p2, %p998_p1 }
   0x8   :  { %p1001_p4 = pnand %p1000_p3, %p994_p0 }
   0xa   :  { %1004 = shalt.err (!%p1001_p4)
}
   0xb   :  { %s1030_s9 = smov 256   ;;  %s1031_s10 = smov 16  }
   0xc   :  { %19 = dma.hbm_to_vmem [thread:$0]  %s1567_s0, 6400, %s14_s7, [#allocation3], %s1030_s9, %s1030_s9, %s1031_s10  }
   0xd   :  { %1025 = dma.done.wait [#allocation3], 6400  }
   0xe   :  { %1026 = vsyncadd [#allocation3], 4294960896  ;;  %vm73_vm0 = vcmask 588800   ;;  %v1046_v0 = vld [vmem:[#allocation2] sm:$0xff]  ;;  %v1048_v1 = vld [vmem:[#allocation2 + $0x8] sm:$0xff]  ;;  %s1032_s0 = smov [#allocation5]  }
   0xf   :  { %v1050_v2 = vld [vmem:[#allocation2 + $0x20] sm:$0xff]  ;;  %v74_v3 = vsel %vm73_vm0, %v1048_v1, -inf  ;;  %v1054_v4 = vld [vmem:[#allocation2 + $0x28] sm:$0xff]  ;;  %v1056_v5 = vld [vmem:[#allocation2 + $0x10] sm:$0xff]  ;;  %s820_s13 = sshll.u32 %s1032_s0, 4  ;;  %s821_s13 = int_to_ptr.vmem [resolvable:$true] %s820_s13 }
  0x10   :  { %v1058_v6 = vld [vmem:[#allocation2 + $0x18] sm:$0xff]  ;;  %v75_v7 = vmax.f32 %v1046_v0, %v74_v3  ;;  %v82_v8 = vsel %vm73_vm0, %v1054_v4, -inf  ;;  %v1065_v10 = vld [vmem:[#allocation2 + $0x30] sm:$0xff]  ;;  %v1072_v14 = vld [vmem:[#allocation2 + $0x48] sm:$0xff]  ;;  %s1005_s15 = scalar_lea.vmem %s821_s13, 128  ;;  %p1010_p6 = scmp.lt.s32.totalorder %s821_s13, %s821_s13 }
  0x11   :  { %v78_v9 = vsel %vm73_vm0, %v1058_v6, -inf  ;;  %v1067_v11 = vld [vmem:[#allocation2 + $0x38] sm:$0xff]  ;;  %v83_v12 = vmax.f32 %v1050_v2, %v82_v8  ;;  %v1078_v18 = vld [vmem:[#allocation2 + $0x40] sm:$0xff]  ;;  %v90_v19 = vsel %vm73_vm0, %v1072_v14, -inf  ;;  %v1082_v20 = vld [vmem:[#allocation2 + $0x50] sm:$0xff]  ;;  %p1006_p5 = scmp.ne.s32.totalorder %s821_s13, %s1005_s15  ;;  %p1011_p7 = scmp.lt.s32.totalorder %s1005_s15, %s1005_s15 }
  0x12   :  { %v86_v13 = vsel %vm73_vm0, %v1067_v11, -inf  ;;  %v1074_v15 = vld [vmem:[#allocation2 + $0x58] sm:$0xff]  ;;  %76 = vmax.xlane.f32.xlu0 %v75_v7  ;;  %v79_v16 = vmax.f32 %v1056_v5, %v78_v9  ;;  %v1086_v22 = vld [vmem:[#allocation2 + $0x68] sm:$0xff]  ;;  %v91_v24 = vmax.f32 %v1078_v18, %v90_v19  ;;  %v1092_v26 = vld [vmem:[#allocation2 + $0x60] sm:$0xff] }
  0x13   :  { %84 = vmax.xlane.f32.xlu1 %v83_v12  ;;  %v87_v17 = vmax.f32 %v1065_v10, %v86_v13  ;;  %v94_v21 = vsel %vm73_vm0, %v1074_v15, -inf  ;;  %v1088_v23 = vld [vmem:[#allocation2 + $0x78] sm:$0xff]  ;;  %v98_v27 = vsel %vm73_vm0, %v1086_v22, -inf  ;;  %v1096_v28 = vld [vmem:[#allocation2 + $0x70] sm:$0xff]  ;;  %v1100_v30 = vld [vmem:[#allocation2 + $0x88] sm:$0xff]  ;;  %p1012_p8 = por %p1011_p7, %p1010_p6 }
  0x14   :  { %v95_v25 = vmax.f32 %v1082_v20, %v94_v21  ;;  %v102_v29 = vsel %vm73_vm0, %v1088_v23, -inf  ;;  %v1102_v31 = vld [vmem:[#allocation2 + $0x98] sm:$0xff]  ;;  %v99_v32 = vmax.f32 %v1092_v26, %v98_v27  ;;  %v1106_v34 = vld [vmem:[#allocation2 + $0x80] sm:$0xff]  ;;  %v106_v35 = vsel %vm73_vm0, %v1100_v30, -inf  ;;  %v1110_v36 = vld [vmem:[#allocation2 + $0x90] sm:$0xff] }
  0x15   :  { %v103_v33 = vmax.f32 %v1096_v28, %v102_v29  ;;  %v110_v37 = vsel %vm73_vm0, %v1102_v31, -inf  ;;  %v1114_v38 = vld [vmem:[#allocation2 + $0xa8] sm:$0xff]  ;;  %v1116_v39 = vld [vmem:[#allocation2 + $0xb8] sm:$0xff]  ;;  %v107_v40 = vmax.f32 %v1106_v34, %v106_v35  ;;  %v1120_v42 = vld [vmem:[#allocation2 + $0xa0] sm:$0xff]  ;;  %v499_v35 = vlaneseq  ;;  %p1013_p9 = pnand %p1012_p8, %p1006_p5 }
  0x16   :  { %80 = vmax.xlane.f32.xlu0 %v79_v16  ;;  %v111_v41 = vmax.f32 %v1110_v36, %v110_v37  ;;  %v114_v43 = vsel %vm73_vm0, %v1114_v38, -inf  ;;  %v1124_v44 = vld [vmem:[#allocation2 + $0xb0] sm:$0xff]  ;;  %v118_v45 = vsel %vm73_vm0, %v1116_v39, -inf  ;;  %v1128_v46 = vld [vmem:[#allocation2 + $0xc8] sm:$0xff]  ;;  %v1130_v47 = vld [vmem:[#allocation2 + $0xd8] sm:$0xff] }
  0x17   :  { %88 = vmax.xlane.f32.xlu1 %v87_v17  ;;  %v115_v48 = vmax.f32 %v1120_v42, %v114_v43  ;;  %v119_v49 = vmax.f32 %v1124_v44, %v118_v45  ;;  %v1134_v50 = vld [vmem:[#allocation2 + $0xc0] sm:$0xff]  ;;  %v122_v51 = vsel %vm73_vm0, %v1128_v46, -inf  ;;  %v1138_v52 = vld [vmem:[#allocation2 + $0xd0] sm:$0xff]  ;;  %v126_v53 = vsel %vm73_vm0, %v1130_v47, -inf  ;;  %v1142_v54 = vld [vmem:[#allocation2 + $0xe8] sm:$0xff] }
  0x18   :  { %v1144_v55 = vld [vmem:[#allocation2 + $0xf8] sm:$0xff]  ;;  %v123_v56 = vmax.f32 %v1134_v50, %v122_v51  ;;  %v127_v57 = vmax.f32 %v1138_v52, %v126_v53  ;;  %v1148_v58 = vld [vmem:[#allocation2 + $0xe0] sm:$0xff]  ;;  %v130_v59 = vsel %vm73_vm0, %v1142_v54, -inf  ;;  %v1152_v60 = vld [vmem:[#allocation2 + $0xf0] sm:$0xff]  ;;  %v1202_v53 = vshrl.u32 %v499_v35, 7 }
  0x19   :  { %v134_v61 = vsel %vm73_vm0, %v1144_v55, -inf  ;;  %v1156_v62 = vld [vmem:[#allocation2 + $0x108] sm:$0xff]  ;;  %v1158_v63 = vld [vmem:[#allocation2 + $0x118] sm:$0xff]  ;;  %v131_v3 = vmax.f32 %v1148_v58, %v130_v59  ;;  %v1162_v8 = vld [vmem:[#allocation2 + $0x100] sm:$0xff] }
  0x1a   :  { %92 = vmax.xlane.f32.xlu0 %v91_v24  ;;  %v135_v7 = vmax.f32 %v1152_v60, %v134_v61  ;;  %v138_v9 = vsel %vm73_vm0, %v1156_v62, -inf  ;;  %v1166_v12 = vld [vmem:[#allocation2 + $0x110] sm:$0xff]  ;;  %v142_v13 = vsel %vm73_vm0, %v1158_v63, -inf  ;;  %v1170_v16 = vld [vmem:[#allocation2 + $0x128] sm:$0xff]  ;;  %v1172_v17 = vld [vmem:[#allocation2 + $0x138] sm:$0xff] }
  0x1b   :  { %96 = vmax.xlane.f32.xlu1 %v95_v25  ;;  %v139_v19 = vmax.f32 %v1162_v8, %v138_v9  ;;  %v143_v21 = vmax.f32 %v1166_v12, %v142_v13  ;;  %v1176_v24 = vld [vmem:[#allocation2 + $0x120] sm:$0xff]  ;;  %v146_v25 = vsel %vm73_vm0, %v1170_v16, -inf  ;;  %v1180_v27 = vld [vmem:[#allocation2 + $0x130] sm:$0xff]  ;;  %v150_v29 = vsel %vm73_vm0, %v1172_v17, -inf  ;;  %v1200_v51 = vld [vmem:[#allocation2 + $0x178] sm:$0xff] }
  0x1c   :  { %v147_v37 = vmax.f32 %v1176_v24, %v146_v25  ;;  %v1194_v45 = vld [vmem:[#allocation2 + $0x150] sm:$0xff]  ;;  %v1206_v59 = vld [vmem:[#allocation2 + $0x160] sm:$0xff]  ;;  %v1214_v9 = vld [vmem:[#allocation2 + $0x188] sm:$0xff]  ;;  %v1216_v13 = vand.u32 127, %v499_v35 }
  0x1e   :  { %100 = vmax.xlane.f32.xlu0 %v99_v32  ;;  %v1184_v32 = vld [vmem:[#allocation2 + $0x148] sm:$0xff]  ;;  %vm528_vm2 = vcmp.eq.s32.totalorder %v1216_v13, %v1202_v53 }
  0x1f   :  { %104 = vmax.xlane.f32.xlu1 %v103_v33  ;;  %v1186_v33 = vld [vmem:[#allocation2 + $0x158] sm:$0xff]  ;;  %v154_v43 = vsel %vm73_vm0, %v1184_v32, -inf }
  0x22   :  { %108 = vmax.xlane.f32.xlu0 %v107_v40  ;;  %v151_v40 = vmax.f32 %v1180_v27, %v150_v29  ;;  %v1221_v29 = vld [vmem:[#allocation2 + $0x180] sm:$0xff] }
  0x23   :  { %112 = vmax.xlane.f32.xlu1 %v111_v41  ;;  %v1190_v41 = vld [vmem:[#allocation2 + $0x140] sm:$0xff] }
  0x26   :  { %116 = vmax.xlane.f32.xlu0 %v115_v48  ;;  %v158_v48 = vsel %vm73_vm0, %v1186_v33, -inf }
  0x27   :  { %120 = vmax.xlane.f32.xlu1 %v119_v49  ;;  %v1198_v49 = vld [vmem:[#allocation2 + $0x168] sm:$0xff] }
  0x28   :  { %v162_v61 = vsel %vm73_vm0, %v1198_v49, -inf }
  0x2a   :  { %124 = vmax.xlane.f32.xlu0 %v123_v56  ;;  %v155_v56 = vmax.f32 %v1190_v41, %v154_v43 }
  0x2b   :  { %128 = vmax.xlane.f32.xlu1 %v127_v57  ;;  %v159_v57 = vmax.f32 %v1194_v45, %v158_v48  ;;  %v506_v48 = vadd.s32 24, %v1202_v53 }
  0x2d   :  { %vm534_vm4 = vcmp.eq.s32.totalorder %v1216_v13, %v506_v48 }
  0x2e   :  { %132 = vmax.xlane.f32.xlu0 %v131_v3  ;;  %v1210_v3 = vld [vmem:[#allocation2 + $0x170] sm:$0xff] }
  0x2f   :  { %136 = vmax.xlane.f32.xlu1 %v135_v7  ;;  %v166_v7 = vsel %vm73_vm0, %v1200_v51, -inf }
  0x30   :  { %v167_v25 = vmax.f32 %v1210_v3, %v166_v7  ;;  %v584_v7 = vsel %vm534_vm4, %v1065_v10, 0.0 }
  0x32   :  { %140 = vmax.xlane.f32.xlu0 %v139_v19  ;;  %v504_v19 = vadd.s32 8, %v1202_v53 }
  0x33   :  { %144 = vmax.xlane.f32.xlu1 %v143_v21  ;;  %v163_v21 = vmax.f32 %v1206_v59, %v162_v61  ;;  %v507_v61 = vadd.s32 32, %v1202_v53 }
  0x34   :  { %vm530_vm1 = vcmp.eq.s32.totalorder %v1216_v13, %v504_v19  ;;  %v508_v19 = vadd.s32 40, %v1202_v53 }
  0x35   :  { %v580_v43 = vsel %vm530_vm1, %v1056_v5, 0.0  ;;  %vm536_vm5 = vcmp.eq.s32.totalorder %v1216_v13, %v507_v61 }
  0x36   :  { %148 = vmax.xlane.f32.xlu0 %v147_v37  ;;  %v170_v37 = vsel %vm73_vm0, %v1214_v9, -inf  ;;  %vm538_vm6 = vcmp.eq.s32.totalorder %v1216_v13, %v508_v19 }
  0x37   :  { %152 = vmax.xlane.f32.xlu1 %v151_v40  ;;  %v505_v40 = vadd.s32 16, %v1202_v53  ;;  %v171_v35 = vmax.f32 %v1221_v29, %v170_v37  ;;  %v588_v37 = vsel %vm538_vm6, %v1082_v20, 0.0 }
  0x39   :  { %vm532_vm3 = vcmp.eq.s32.totalorder %v1216_v13, %v505_v40  ;;  %v510_v40 = vadd.s32 56, %v1202_v53 }
  0x3a   :  { %156 = vmax.xlane.f32.xlu0 %v155_v56  ;;  %v578_v56 = vsel %vm528_vm2, %v1046_v0, 0.0 }
  0x3b   :  { %160 = vmax.xlane.f32.xlu1 %v159_v57  ;;  %v582_v57 = vsel %vm532_vm3, %v1050_v2, 0.0  ;;  %vm542_vm8 = vcmp.eq.s32.totalorder %v1216_v13, %v510_v40 }
  0x3c   :  { %v592_v48 = vsel %vm542_vm8, %v1096_v28, 0.0 }
  0x3e   :  { %164 = vmax.xlane.f32.xlu0 %v163_v21  ;;  %v586_v21 = vsel %vm536_vm5, %v1078_v18, 0.0 }
  0x3f   :  { %168 = vmax.xlane.f32.xlu1 %v167_v25  ;;  %v509_v25 = vadd.s32 48, %v1202_v53 }
  0x41   :  { %vm540_vm7 = vcmp.eq.s32.totalorder %v1216_v13, %v509_v25 }
  0x42   :  { %172 = vmax.xlane.f32.xlu0 %v171_v35  ;;  %v590_v35 = vsel %vm540_vm7, %v1092_v26, 0.0 }
  0x43   :  { %634 = vadd.xlane.f32.xlu1 %v580_v43  ;;  %v511_v43 = vadd.s32 64, %v1202_v53 }
  0x45   :  { %vm544_vm9 = vcmp.eq.s32.totalorder %v1216_v13, %v511_v43 }
  0x46   :  { %630 = vadd.xlane.f32.xlu0 %v578_v56  ;;  %v594_v56 = vsel %vm544_vm9, %v1106_v34, 0.0 }
  0x47   :  { %638 = vadd.xlane.f32.xlu1 %v582_v57 }
  0x4b   :  { %642 = vadd.xlane.f32.xlu1 %v584_v7 }
  0x4f   :  { %646 = vadd.xlane.f32.xlu1 %v586_v21 }
  0x53   :  { %650 = vadd.xlane.f32.xlu1 %v588_v37 }
  0x57   :  { %654 = vadd.xlane.f32.xlu1 %v590_v35 }
  0x5b   :  { %658 = vadd.xlane.f32.xlu1 %v592_v48 }
  0x5f   :  { %662 = vadd.xlane.f32.xlu1 %v594_v56 }
  0x9b   :  { %v1252_v57 = vpop.xlane.xlu0 %76 }
  0x9c   :  { %v174_v61 = vsub.f32 %v1046_v0, %v1252_v57  ;;  %v175_v7 = vsub.f32 %v1048_v1, %v1252_v57  ;;  %v1258_v19 = vpop.xlane.xlu1 %84 }
  0x9d   :  { %v178_v21 = vsub.f32 %v1050_v2, %v1258_v19  ;;  %v179_v25 = vsub.f32 %v1054_v4, %v1258_v19 }
  0x9e   :  { %v224_v37 = vmul.f32 1.442695, %v174_v61  ;;  %v226_v40 = vmul.f32 1.442695, %v175_v7 }
  0x9f   :  { %v232_v35 = vmul.f32 1.442695, %v178_v21  ;;  %v234_v43 = vmul.f32 1.442695, %v179_v25  ;;  %v1264_v48 = vpop.xlane.xlu0 %80 }
  0xa0   :  { %835 = vpow2.f32 %v224_v37  ;;  %v176_v0 = vsub.f32 %v1056_v5, %v1264_v48  ;;  %v177_v1 = vsub.f32 %v1058_v6, %v1264_v48  ;;  %v1270_v56 = vpop.xlane.xlu1 %88 }
  0xa1   :  { %837 = vpow2.f32 %v226_v40  ;;  %v180_v2 = vsub.f32 %v1065_v10, %v1270_v56  ;;  %v181_v4 = vsub.f32 %v1067_v11, %v1270_v56 }
  0xa2   :  { %839 = vpow2.f32 %v232_v35  ;;  %v228_v61 = vmul.f32 1.442695, %v176_v0  ;;  %v230_v7 = vmul.f32 1.442695, %v177_v1 }
  0xa3   :  { %841 = vpow2.f32 %v234_v43  ;;  %v236_v21 = vmul.f32 1.442695, %v180_v2  ;;  %v238_v25 = vmul.f32 1.442695, %v181_v4  ;;  %v1276_v37 = vpop.xlane.xlu0 %92 }
  0xa4   :  { %843 = vpow2.f32 %v228_v61  ;;  %v182_v5 = vsub.f32 %v1078_v18, %v1276_v37  ;;  %v183_v6 = vsub.f32 %v1072_v14, %v1276_v37  ;;  %v1282_v40 = vpop.xlane.xlu1 %96 }
  0xa5   :  { %845 = vpow2.f32 %v230_v7  ;;  %v184_v10 = vsub.f32 %v1082_v20, %v1282_v40  ;;  %v185_v11 = vsub.f32 %v1074_v15, %v1282_v40 }
  0xa6   :  { %847 = vpow2.f32 %v236_v21  ;;  %v240_v35 = vmul.f32 1.442695, %v182_v5  ;;  %v242_v43 = vmul.f32 1.442695, %v183_v6 }
  0xa7   :  { %849 = vpow2.f32 %v238_v25  ;;  %v244_v0 = vmul.f32 1.442695, %v184_v10  ;;  %v246_v1 = vmul.f32 1.442695, %v185_v11  ;;  %v1288_v2 = vpop.xlane.xlu0 %100 }
  0xa8   :  { %851 = vpow2.f32 %v240_v35  ;;  %v186_v14 = vsub.f32 %v1092_v26, %v1288_v2  ;;  %v187_v18 = vsub.f32 %v1086_v22, %v1288_v2  ;;  %v1294_v4 = vpop.xlane.xlu1 %104 }
  0xa9   :  { %853 = vpow2.f32 %v242_v43  ;;  %v188_v15 = vsub.f32 %v1096_v28, %v1294_v4  ;;  %v189_v20 = vsub.f32 %v1088_v23, %v1294_v4 }
  0xaa   :  { %855 = vpow2.f32 %v244_v0  ;;  %v248_v61 = vmul.f32 1.442695, %v186_v14  ;;  %v250_v7 = vmul.f32 1.442695, %v187_v18 }
  0xab   :  { %857 = vpow2.f32 %v246_v1  ;;  %v252_v21 = vmul.f32 1.442695, %v188_v15  ;;  %v254_v25 = vmul.f32 1.442695, %v189_v20  ;;  %v1300_v5 = vpop.xlane.xlu0 %108 }
  0xac   :  { %859 = vpow2.f32 %v248_v61  ;;  %v190_v22 = vsub.f32 %v1106_v34, %v1300_v5  ;;  %v191_v26 = vsub.f32 %v1100_v30, %v1300_v5  ;;  %v1306_v6 = vpop.xlane.xlu1 %112 }
  0xad   :  { %1572 = vst [vmem:[#allocation8_spill] sm:$0xff] %v1306_v6  ;;  %v836_v28 = vpop.eup %835  ;;  %861 = vpow2.f32 %v250_v7  ;;  %v192_v23 = vsub.f32 %v1110_v36, %v1306_v6  ;;  %v193_v10 = vsub.f32 %v1102_v31, %v1306_v6 }
  0xae   :  { %v838_v11 = vpop.eup %837  ;;  %863 = vpow2.f32 %v252_v21  ;;  %v256_v35 = vmul.f32 1.442695, %v190_v22  ;;  %v258_v43 = vmul.f32 1.442695, %v191_v26 }
  0xaf   :  { %v840_v0 = vpop.eup %839  ;;  %865 = vpow2.f32 %v254_v25  ;;  %v260_v34 = vmul.f32 1.442695, %v192_v23  ;;  %v262_v1 = vmul.f32 1.442695, %v193_v10  ;;  %v1312_v14 = vpop.xlane.xlu0 %116  ;;  %v324_v30 = vsel %vm73_vm0, %v838_v11, 0.0 }
  0xb0   :  { %1573 = vst [vmem:[#allocation9_spill] sm:$0xff] %v1312_v14  ;;  %v842_v18 = vpop.eup %841  ;;  %867 = vpow2.f32 %v256_v35  ;;  %v194_v15 = vsub.f32 %v1120_v42, %v1312_v14  ;;  %v195_v31 = vsub.f32 %v1114_v38, %v1312_v14  ;;  %v325_v20 = vadd.f32 %v836_v28, %v324_v30  ;;  %v1319_v61 = vpop.xlane.xlu1 %120 }
  0xb1   :  { %v844_v7 = vpop.eup %843  ;;  %869 = vpow2.f32 %v258_v43  ;;  %v196_v21 = vsub.f32 %v1124_v44, %v1319_v61  ;;  %v197_v25 = vsub.f32 %v1116_v39, %v1319_v61  ;;  %v332_v22 = vsel %vm73_vm0, %v842_v18, 0.0 }
  0xb2   :  { %v846_v26 = vpop.eup %845  ;;  %871 = vpow2.f32 %v260_v34  ;;  %v264_v23 = vmul.f32 1.442695, %v194_v15  ;;  %v266_v10 = vmul.f32 1.442695, %v195_v31  ;;  %326 = vadd.xlane.f32.xlu1 %v325_v20  ;;  %v333_v11 = vadd.f32 %v840_v0, %v332_v22 }
  0xb3   :  { %v848_v38 = vpop.eup %847  ;;  %873 = vpow2.f32 %v262_v1  ;;  %v268_v28 = vmul.f32 1.442695, %v196_v21  ;;  %v270_v35 = vmul.f32 1.442695, %v197_v25  ;;  %v328_v43 = vsel %vm73_vm0, %v846_v26, 0.0  ;;  %v1327_v30 = vpop.xlane.xlu0 %124 }
  0xb4   :  { %v850_v14 = vpop.eup %849  ;;  %875 = vpow2.f32 %v264_v23  ;;  %v329_v6 = vadd.f32 %v844_v7, %v328_v43  ;;  %v198_v39 = vsub.f32 %v1134_v50, %v1327_v30  ;;  %v199_v34 = vsub.f32 %v1128_v46, %v1327_v30  ;;  %v1333_v18 = vpop.xlane.xlu1 %128 }
  0xb5   :  { %v852_v0 = vpop.eup %851  ;;  %877 = vpow2.f32 %v266_v10  ;;  %v336_v1 = vsel %vm73_vm0, %v850_v14, 0.0  ;;  %v200_v15 = vsub.f32 %v1138_v52, %v1333_v18  ;;  %v201_v31 = vsub.f32 %v1130_v47, %v1333_v18 }
  0xb6   :  { %v854_v20 = vpop.eup %853  ;;  %879 = vpow2.f32 %v268_v28  ;;  %334 = vadd.xlane.f32.xlu1 %v333_v11  ;;  %330 = vadd.xlane.f32.xlu0 %v329_v6  ;;  %v272_v7 = vmul.f32 1.442695, %v198_v39  ;;  %v274_v21 = vmul.f32 1.442695, %v199_v34  ;;  %v337_v25 = vadd.f32 %v848_v38, %v336_v1 }
  0xb7   :  { %v856_v46 = vpop.eup %855  ;;  %881 = vpow2.f32 %v270_v35  ;;  %v340_v22 = vsel %vm73_vm0, %v854_v20, 0.0  ;;  %v278_v26 = vmul.f32 1.442695, %v201_v31  ;;  %v1341_v23 = vpop.xlane.xlu0 %132  ;;  %v276_v38 = vmul.f32 1.442695, %v200_v15 }
  0xb8   :  { %v858_v14 = vpop.eup %857  ;;  %v341_v10 = vadd.f32 %v852_v0, %v340_v22  ;;  %v203_v43 = vsub.f32 %v1142_v54, %v1341_v23  ;;  %v1345_v47 = vpop.xlane.xlu1 %136  ;;  %883 = vpow2.f32 %v274_v21  ;;  %v202_v39 = vsub.f32 %v1148_v58, %v1341_v23 }
  0xb9   :  { %1574 = vst [vmem:[#allocation10_spill] sm:$0xff] %v1345_v47  ;;  %v860_v28 = vpop.eup %859  ;;  %v344_v6 = vsel %vm73_vm0, %v858_v14, 0.0  ;;  %885 = vpow2.f32 %v272_v7  ;;  %v205_v1 = vsub.f32 %v1144_v55, %v1345_v47  ;;  %v512_v15 = vadd.s32 72, %v1202_v53 }
  0xba   :  { %v862_v11 = vpop.eup %861  ;;  %338 = vadd.xlane.f32.xlu0 %v337_v25  ;;  %342 = vadd.xlane.f32.xlu1 %v341_v10  ;;  %v345_v35 = vadd.f32 %v856_v46, %v344_v6  ;;  %887 = vpow2.f32 %v278_v26  ;;  %v282_v54 = vmul.f32 1.442695, %v203_v43  ;;  %v280_v22 = vmul.f32 1.442695, %v202_v39 }
  0xbb   :  { %v864_v34 = vpop.eup %863  ;;  %v348_v0 = vsel %vm73_vm0, %v862_v11, 0.0  ;;  %v1353_v21 = vpop.xlane.xlu0 %140  ;;  %889 = vpow2.f32 %v276_v38  ;;  %v204_v14 = vsub.f32 %v1152_v60, %v1345_v47  ;;  %v286_v43 = vmul.f32 1.442695, %v205_v1 }
  0xbc   :  { %v866_v31 = vpop.eup %865  ;;  %v349_v20 = vadd.f32 %v860_v28, %v348_v0  ;;  %891 = vpow2.f32 %v282_v54  ;;  %v207_v28 = vsub.f32 %v1156_v62, %v1353_v21  ;;  %v1362_v0 = vpop.xlane.xlu1 %144  ;;  %vm546_vm10 = vcmp.eq.s32.totalorder %v1216_v13, %v512_v15 }
  0xbd   :  { %v868_v7 = vpop.eup %867  ;;  %v352_v25 = vsel %vm73_vm0, %v866_v31, 0.0  ;;  %v513_v39 = vadd.s32 80, %v1202_v53  ;;  %893 = vpow2.f32 %v280_v22  ;;  %v284_v54 = vmul.f32 1.442695, %v204_v14 }
  0xbe   :  { %v870_v46 = vpop.eup %869  ;;  %346 = vadd.xlane.f32.xlu0 %v345_v35  ;;  %350 = vadd.xlane.f32.xlu1 %v349_v20  ;;  %v353_v26 = vadd.f32 %v864_v34, %v352_v25  ;;  %v206_v31 = vsub.f32 %v1162_v8, %v1353_v21  ;;  %895 = vpow2.f32 %v286_v43  ;;  %v290_v25 = vmul.f32 1.442695, %v207_v28 }
  0xbf   :  { %v872_v10 = vpop.eup %871  ;;  %v356_v55 = vsel %vm73_vm0, %v870_v46, 0.0  ;;  %v209_v46 = vsub.f32 %v1158_v63, %v1362_v0  ;;  %v1372_v47 = vpop.xlane.xlu0 %148  ;;  %vm548_vm11 = vcmp.eq.s32.totalorder %v1216_v13, %v513_v39  ;;  %v514_v8 = vadd.s32 88, %v1202_v53 }
  0xc0   :  { %v874_v6 = vpop.eup %873  ;;  %v357_v11 = vadd.f32 %v868_v7, %v356_v55  ;;  %897 = vpow2.f32 %v284_v54  ;;  %v208_v28 = vsub.f32 %v1166_v12, %v1362_v0  ;;  %v598_v54 = vsel %vm548_vm11, %v1120_v42, 0.0 }
  0xc1   :  { %v876_v38 = vpop.eup %875  ;;  %v360_v35 = vsel %vm73_vm0, %v874_v6, 0.0  ;;  %899 = vpow2.f32 %v290_v25  ;;  %vm550_vm12 = vcmp.eq.s32.totalorder %v1216_v13, %v514_v8 }
  0xc2   :  { %v878_v34 = vpop.eup %877  ;;  %354 = vadd.xlane.f32.xlu0 %v353_v26  ;;  %358 = vadd.xlane.f32.xlu1 %v357_v11  ;;  %v361_v1 = vadd.f32 %v872_v10, %v360_v35  ;;  %v596_v26 = vsel %vm546_vm10, %v1110_v36, 0.0  ;;  %v288_v10 = vmul.f32 1.442695, %v206_v31  ;;  %v211_v36 = vsub.f32 %v1170_v16, %v1372_v47 }
  0xc3   :  { %v880_v20 = vpop.eup %879  ;;  %v364_v7 = vsel %vm73_vm0, %v878_v34, 0.0  ;;  %v1385_v34 = vpop.xlane.xlu1 %152  ;;  %v292_v12 = vmul.f32 1.442695, %v208_v28 }
  0xc4   :  { %v882_v55 = vpop.eup %881  ;;  %v365_v6 = vadd.f32 %v876_v38, %v364_v7  ;;  %v294_v38 = vmul.f32 1.442695, %v209_v46  ;;  %901 = vpow2.f32 %v288_v10  ;;  %v298_v25 = vmul.f32 1.442695, %v211_v36 }
  0xc5   :  { %v368_v22 = vsel %vm73_vm0, %v882_v55, 0.0  ;;  %v884_v14 = vpop.eup %883  ;;  %v213_v42 = vsub.f32 %v1172_v17, %v1385_v34  ;;  %v1397_v55 = vpop.xlane.xlu0 %156  ;;  %v212_v8 = vsub.f32 %v1180_v27, %v1385_v34 }
  0xc6   :  { %362 = vadd.xlane.f32.xlu0 %v361_v1  ;;  %366 = vadd.xlane.f32.xlu1 %v365_v6  ;;  %v369_v43 = vadd.f32 %v880_v20, %v368_v22  ;;  %v886_v11 = vpop.eup %885  ;;  %v372_v35 = vsel %vm73_vm0, %v884_v14, 0.0  ;;  %v515_v1 = vadd.s32 96, %v1202_v53  ;;  %v210_v20 = vsub.f32 %v1176_v24, %v1372_v47 }
  0xc7   :  { %v888_v15 = vpop.eup %887  ;;  %v373_v31 = vadd.f32 %v886_v11, %v372_v35  ;;  %903 = vpow2.f32 %v294_v38  ;;  %v600_v6 = vsel %vm550_vm12, %v1124_v44, 0.0  ;;  %v516_v22 = vadd.s32 104, %v1202_v53  ;;  %v1407_v11 = vpop.xlane.xlu1 %160 }
  0xc8   :  { %v890_v7 = vpop.eup %889  ;;  %v376_v46 = vsel %vm73_vm0, %v888_v15, 0.0  ;;  %vm552_vm13 = vcmp.eq.s32.totalorder %v1216_v13, %v515_v1  ;;  %905 = vpow2.f32 %v292_v12  ;;  %v296_v24 = vmul.f32 1.442695, %v210_v20 }
  0xc9   :  { %v892_v39 = vpop.eup %891  ;;  %907 = vpow2.f32 %v298_v25  ;;  %v302_v10 = vmul.f32 1.442695, %v213_v42  ;;  %v215_v44 = vsub.f32 %v1184_v32, %v1397_v55  ;;  %v602_v38 = vsel %vm552_vm13, %v1134_v50, 0.0  ;;  %v1417_v20 = vpop.xlane.xlu0 %164 }
  0xca   :  { %370 = vadd.xlane.f32.xlu0 %v369_v43  ;;  %666 = vadd.xlane.f32.xlu1 %v596_v26  ;;  %v377_v26 = vadd.f32 %v890_v7, %v376_v46  ;;  %v894_v14 = vpop.eup %893  ;;  %v380_v43 = vsel %vm73_vm0, %v892_v39, 0.0  ;;  %vm554_vm14 = vcmp.eq.s32.totalorder %v1216_v13, %v516_v22  ;;  %v517_v35 = vadd.s32 112, %v1202_v53 }
  0xcb   :  { %v896_v28 = vpop.eup %895  ;;  %909 = vpow2.f32 %v296_v24  ;;  %v300_v27 = vmul.f32 1.442695, %v212_v8  ;;  %v381_v36 = vadd.f32 %v894_v14, %v380_v43  ;;  %v214_v15 = vsub.f32 %v1190_v41, %v1397_v55 }
  0xcc   :  { %911 = vpow2.f32 %v302_v10  ;;  %v306_v1 = vmul.f32 1.442695, %v215_v44  ;;  %v384_v12 = vsel %vm73_vm0, %v896_v28, 0.0  ;;  %v217_v50 = vsub.f32 %v1186_v33, %v1407_v11 }
  0xcd   :  { %v604_v7 = vsel %vm554_vm14, %v1138_v52, 0.0  ;;  %vm556_vm15 = vcmp.eq.s32.totalorder %v1216_v13, %v517_v35  ;;  %v518_v25 = vadd.s32 120, %v1202_v53  ;;  %913 = vpow2.f32 %v300_v27 }
  0xce   :  { %374 = vadd.xlane.f32.xlu0 %v373_v31  ;;  %670 = vadd.xlane.f32.xlu1 %v598_v54  ;;  %v898_v54 = vpop.eup %897  ;;  %v304_v41 = vmul.f32 1.442695, %v214_v15  ;;  %v216_v42 = vsub.f32 %v1194_v45, %v1407_v11  ;;  %915 = vpow2.f32 %v306_v1  ;;  %v219_v52 = vsub.f32 %v1198_v49, %v1417_v20 }
  0xcf   :  { %v900_v31 = vpop.eup %899  ;;  %v385_v46 = vadd.f32 %v898_v54, %v384_v12  ;;  %v606_v8 = vsel %vm556_vm15, %v1148_v58, 0.0  ;;  %vm558_vm1 = vcmp.eq.s32.totalorder %v1216_v13, %v518_v25  ;;  %v1432_v14 = vadd.s32 128, %v1216_v13 }
  0xd0   :  { %v388_v22 = vsel %vm73_vm0, %v900_v31, 0.0  ;;  %v520_v45 = vadd.s32 136, %v1202_v53  ;;  %917 = vpow2.f32 %v304_v41  ;;  %v308_v10 = vmul.f32 1.442695, %v216_v42 }
  0xd1   :  { %v902_v39 = vpop.eup %901  ;;  %v218_v44 = vsub.f32 %v1206_v59, %v1417_v20  ;;  %v608_v15 = vsel %vm558_vm1, %v1152_v60, 0.0  ;;  %v522_v59 = vadd.s32 152, %v1202_v53  ;;  %v524_v41 = vadd.s32 168, %v1202_v53 }
  0xd2   :  { %378 = vadd.xlane.f32.xlu0 %v377_v26  ;;  %674 = vadd.xlane.f32.xlu1 %v600_v6  ;;  %v310_v6 = vmul.f32 1.442695, %v217_v50  ;;  %v1427_v26 = vpop.xlane.xlu1 %168  ;;  %v389_v43 = vadd.f32 %v902_v39, %v388_v22  ;;  %vm563_vm2 = vcmp.eq.s32.totalorder %v1432_v14, %v520_v45 }
  0xd3   :  { %v221_v35 = vsub.f32 %v1200_v51, %v1427_v26  ;;  %v312_v54 = vmul.f32 1.442695, %v218_v44  ;;  %v220_v12 = vsub.f32 %v1210_v3, %v1427_v26  ;;  %v613_v25 = vsel %vm563_vm2, %v1158_v63, 0.0 }
  0xd4   :  { %v904_v24 = vpop.eup %903  ;;  %919 = vpow2.f32 %v310_v6  ;;  %vm567_vm3 = vcmp.eq.s32.totalorder %v1432_v14, %v522_v59  ;;  %vm571_vm4 = vcmp.eq.s32.totalorder %v1432_v14, %v524_v41 }
  0xd5   :  { %v906_v28 = vpop.eup %905  ;;  %v392_v58 = vsel %vm73_vm0, %v904_v24, 0.0  ;;  %921 = vpow2.f32 %v308_v10  ;;  %v318_v31 = vmul.f32 1.442695, %v221_v35  ;;  %v617_v24 = vsel %vm567_vm3, %v1172_v17, 0.0 }
  0xd6   :  { %382 = vadd.xlane.f32.xlu0 %v381_v36  ;;  %678 = vadd.xlane.f32.xlu1 %v602_v38  ;;  %v314_v38 = vmul.f32 1.442695, %v219_v52  ;;  %v908_v27 = vpop.eup %907  ;;  %v1440_v36 = vpop.xlane.xlu0 %172  ;;  %v393_v1 = vadd.f32 %v906_v28, %v392_v58  ;;  %v696_v52 = vsel %vm73_vm0, %v613_v25, 0.0  ;;  %v704_v44 = vsel %vm73_vm0, %v617_v24, 0.0 }
  0xd7   :  { %v223_v60 = vsub.f32 %v1214_v9, %v1440_v36  ;;  %v222_v42 = vsub.f32 %v1221_v29, %v1440_v36  ;;  %v519_v25 = vadd.s32 128, %v1202_v53 }
  0xd8   :  { %v910_v50 = vpop.eup %909  ;;  %923 = vpow2.f32 %v314_v38  ;;  %v621_v38 = vsel %vm571_vm4, %v1186_v33, 0.0 }
  0xd9   :  { %v912_v13 = vpop.eup %911  ;;  %925 = vpow2.f32 %v312_v54  ;;  %v322_v6 = vmul.f32 1.442695, %v223_v60  ;;  %v320_v45 = vmul.f32 1.442695, %v222_v42  ;;  %vm561_vm6 = vcmp.eq.s32.totalorder %v1432_v14, %v519_v25 }
  0xda   :  { %386 = vadd.xlane.f32.xlu0 %v385_v46  ;;  %682 = vadd.xlane.f32.xlu1 %v604_v7  ;;  %v396_v7 = vsel %vm73_vm0, %v908_v27, 0.0  ;;  %v316_v46 = vmul.f32 1.442695, %v220_v12  ;;  %v914_v39 = vpop.eup %913  ;;  %927 = vpow2.f32 %v318_v31  ;;  %v400_v22 = vsel %vm73_vm0, %v912_v13, 0.0 }
  0xdb   :  { %v397_v3 = vadd.f32 %v910_v50, %v396_v7  ;;  %v916_v63 = vpop.eup %915  ;;  %v401_v10 = vadd.f32 %v914_v39, %v400_v22  ;;  %v712_v27 = vsel %vm73_vm0, %v621_v38, 0.0  ;;  %v611_v39 = vsel %vm561_vm6, %v1156_v62, 0.0 }
  0xdc   :  { %929 = vpow2.f32 %v316_v46  ;;  %v692_v22 = vsel %vm73_vm0, %v611_v39, 0.0  ;;  %v527_v62 = vadd.s32 192, %v1202_v53 }
  0xdd   :  { %v918_v29 = vpop.eup %917  ;;  %931 = vpow2.f32 %v322_v6  ;;  %v523_v6 = vadd.s32 160, %v1202_v53 }
  0xde   :  { %390 = vadd.xlane.f32.xlu0 %v389_v43  ;;  %686 = vadd.xlane.f32.xlu1 %v606_v8  ;;  %v526_v8 = vadd.s32 184, %v1202_v53  ;;  %v404_v43 = vsel %vm73_vm0, %v916_v63, 0.0  ;;  %933 = vpow2.f32 %v320_v45  ;;  %v525_v63 = vadd.s32 176, %v1202_v53 }
  0xdf   :  { %v405_v17 = vadd.f32 %v918_v29, %v404_v43  ;;  %vm569_vm8 = vcmp.eq.s32.totalorder %v1432_v14, %v523_v6  ;;  %vm577_vm10 = vcmp.eq.s32.totalorder %v1432_v14, %v527_v62  ;;  %v635_v29 = vpop.xlane.xlu1 %634 }
  0xe0   :  { %vm575_vm5 = vcmp.eq.s32.totalorder %v1432_v14, %v526_v8  ;;  %v619_v8 = vsel %vm569_vm8, %v1184_v32, 0.0  ;;  %vm573_vm9 = vcmp.eq.s32.totalorder %v1432_v14, %v525_v63  ;;  %v627_v43 = vsel %vm577_vm10, %v1214_v9, 0.0 }
  0xe1   :  { %v920_v28 = vpop.eup %919  ;;  %v625_v59 = vsel %vm575_vm5, %v1200_v51, 0.0  ;;  %v708_v45 = vsel %vm73_vm0, %v619_v8, 0.0  ;;  %v724_v32 = vsel %vm73_vm0, %v627_v43, 0.0 }
  0xe2   :  { %394 = vadd.xlane.f32.xlu0 %v393_v1  ;;  %690 = vadd.xlane.f32.xlu1 %v608_v15  ;;  %v922_v58 = vpop.eup %921  ;;  %v408_v35 = vsel %vm73_vm0, %v920_v28, 0.0  ;;  %v720_v12 = vsel %vm73_vm0, %v625_v59, 0.0 }
  0xe3   :  { %v409_v54 = vadd.f32 %v922_v58, %v408_v35  ;;  %v631_v58 = vpop.xlane.xlu0 %630 }
  0xe5   :  { %v924_v15 = vpop.eup %923 }
  0xe6   :  { %398 = vadd.xlane.f32.xlu0 %v397_v3  ;;  %698 = vadd.xlane.f32.xlu1 %v696_v52  ;;  %v926_v1 = vpop.eup %925  ;;  %v412_v33 = vsel %vm73_vm0, %v924_v15, 0.0  ;;  %v521_v3 = vadd.s32 144, %v1202_v53 }
  0xe7   :  { %v928_v50 = vpop.eup %927  ;;  %v413_v31 = vadd.f32 %v926_v1, %v412_v33 }
  0xe8   :  { %v416_v60 = vsel %vm73_vm0, %v928_v50, 0.0  ;;  %vm565_vm7 = vcmp.eq.s32.totalorder %v1432_v14, %v521_v3 }
  0xe9   :  { %v930_v7 = vpop.eup %929  ;;  %v615_v52 = vsel %vm565_vm7, %v1170_v16, 0.0 }
  0xea   :  { %402 = vadd.xlane.f32.xlu0 %v401_v10  ;;  %706 = vadd.xlane.f32.xlu1 %v704_v44  ;;  %v932_v13 = vpop.eup %931  ;;  %v417_v51 = vadd.f32 %v930_v7, %v416_v60  ;;  %v700_v24 = vsel %vm73_vm0, %v615_v52, 0.0  ;;  %v623_v10 = vsel %vm573_vm9, %v1198_v49, 0.0  ;;  %v639_v44 = vpop.xlane.xlu1 %638 }
  0xeb   :  { %v934_v41 = vpop.eup %933  ;;  %v420_v46 = vsel %vm73_vm0, %v932_v13, 0.0  ;;  %v716_v16 = vsel %vm73_vm0, %v623_v10, 0.0  ;;  %vm753_vm0 = vcmask 7168  }
  0xec   :  { %v421_v42 = vadd.f32 %v934_v41, %v420_v46 }
  0xee   :  { %406 = vadd.xlane.f32.xlu0 %v405_v17  ;;  %714 = vadd.xlane.f32.xlu1 %v712_v27  ;;  %v643_v28 = vpop.xlane.xlu1 %642 }
  0xf2   :  { %410 = vadd.xlane.f32.xlu0 %v409_v54  ;;  %722 = vadd.xlane.f32.xlu1 %v720_v12  ;;  %v1493_v53 = vpop.xlane.xlu1 %646 }
  0xf6   :  { %414 = vadd.xlane.f32.xlu0 %v413_v31  ;;  %v1495_v38 = vpop.xlane.xlu1 %650 }
  0xfa   :  { %418 = vadd.xlane.f32.xlu0 %v417_v51  ;;  %v1497_v17 = vpop.xlane.xlu1 %654 }
  0xfe   :  { %422 = vadd.xlane.f32.xlu0 %v421_v42  ;;  %v1499_v49 = vpop.xlane.xlu1 %658 }
 0x102   :  { %694 = vadd.xlane.f32.xlu0 %v692_v22  ;;  %v1501_v14 = vpop.xlane.xlu1 %662 }
 0x106   :  { %702 = vadd.xlane.f32.xlu0 %v700_v24 }
 0x10a   :  { %710 = vadd.xlane.f32.xlu0 %v708_v45 }
 0x10e   :  { %718 = vadd.xlane.f32.xlu0 %v716_v16 }
 0x112   :  { %726 = vadd.xlane.f32.xlu0 %v724_v32 }
 0x13b   :  { %v327_v35 = vpop.xlane.xlu1 %326 }
 0x13c   :  { %935 = vlog2.f32 %v327_v35 }
 0x13f   :  { %v331_v27 = vpop.xlane.xlu0 %330  ;;  %v335_v9 = vpop.xlane.xlu1 %334 }
 0x140   :  { %937 = vlog2.f32 %v331_v27 }
 0x141   :  { %939 = vlog2.f32 %v335_v9 }
 0x143   :  { %v339_v15 = vpop.xlane.xlu0 %338  ;;  %v343_v54 = vpop.xlane.xlu1 %342 }
 0x144   :  { %941 = vlog2.f32 %v339_v15 }
 0x145   :  { %943 = vlog2.f32 %v343_v54 }
 0x147   :  { %v347_v59 = vpop.xlane.xlu0 %346  ;;  %v351_v31 = vpop.xlane.xlu1 %350 }
 0x148   :  { %945 = vlog2.f32 %v347_v59 }
 0x149   :  { %v936_v33 = vpop.eup %935  ;;  %947 = vlog2.f32 %v351_v31 }
 0x14a   :  { %v425_v60 = vmul.f32 0.6931472, %v936_v33 }
 0x14b   :  { %v355_v1 = vpop.xlane.xlu0 %354  ;;  %v359_v42 = vpop.xlane.xlu1 %358 }
 0x14c   :  { %v474_v46 = vadd.f32 %v425_v60, %v1252_v57  ;;  %949 = vlog2.f32 %v355_v1 }
 0x14d   :  { %v938_v12 = vpop.eup %937  ;;  %951 = vlog2.f32 %v359_v42 }
 0x14e   :  { %v427_v50 = vmul.f32 0.6931472, %v938_v12  ;;  %v940_v13 = vpop.eup %939  ;;  %v728_v52 = vsub.f32 %v474_v46, %v631_v58 }
 0x14f   :  { %v363_v7 = vpop.xlane.xlu0 %362  ;;  %v429_v3 = vmul.f32 0.6931472, %v940_v13  ;;  %v367_v45 = vpop.xlane.xlu1 %366 }
 0x150   :  { %v475_v25 = vadd.f32 %v427_v50, %v1264_v48  ;;  %v754_v57 = vsel %vm753_vm0, %v728_v52, 0.0  ;;  %953 = vlog2.f32 %v363_v7 }
 0x151   :  { %v942_v51 = vpop.eup %941  ;;  %v476_v63 = vadd.f32 %v429_v3, %v1258_v19  ;;  %955 = vlog2.f32 %v367_v45 }
 0x152   :  { %v729_v39 = vsub.f32 %v475_v25, %v635_v29  ;;  %v431_v6 = vmul.f32 0.6931472, %v942_v51  ;;  %v944_v24 = vpop.eup %943 }
 0x153   :  { %v371_v41 = vpop.xlane.xlu0 %370  ;;  %v730_v16 = vsub.f32 %v476_v63, %v639_v44  ;;  %v433_v43 = vmul.f32 0.6931472, %v944_v24  ;;  %v1509_v58 = vpop.xlane.xlu1 %666 }
 0x154   :  { %v755_v8 = vsel %vm753_vm0, %v729_v39, 0.0  ;;  %v477_v48 = vadd.f32 %v431_v6, %v1270_v56  ;;  %957 = vlog2.f32 %v371_v41 }
 0x155   :  { %v946_v62 = vpop.eup %945  ;;  %v756_v29 = vadd.f32 %v755_v8, %v754_v57  ;;  %v757_v27 = vsel %vm753_vm0, %v730_v16, 0.0  ;;  %v478_v9 = vadd.f32 %v433_v43, %v1276_v37 }
 0x156   :  { %v731_v32 = vsub.f32 %v477_v48, %v643_v28  ;;  %v435_v35 = vmul.f32 0.6931472, %v946_v62  ;;  %v948_v56 = vpop.eup %947  ;;  %v1575_v48 = vld [vmem:[#allocation8_spill] sm:$0xff] }
 0x157   :  { %v375_v22 = vpop.xlane.xlu0 %374  ;;  %v758_v15 = vadd.f32 %v757_v27, %v756_v29  ;;  %v732_v33 = vsub.f32 %v478_v9, %v1493_v53  ;;  %v437_v28 = vmul.f32 0.6931472, %v948_v56  ;;  %v1516_v50 = vpop.xlane.xlu1 %670  ;;  %v1576_v56 = vld [vmem:[#allocation9_spill] sm:$0xff] }
 0x158   :  { %v759_v59 = vsel %vm753_vm0, %v731_v32, 0.0  ;;  %v479_v54 = vadd.f32 %v435_v35, %v1282_v40  ;;  %959 = vlog2.f32 %v375_v22 }
 0x159   :  { %v950_v44 = vpop.eup %949  ;;  %v760_v12 = vadd.f32 %v759_v59, %v758_v15  ;;  %v761_v60 = vsel %vm753_vm0, %v732_v33, 0.0  ;;  %v480_v13 = vadd.f32 %v437_v28, %v1288_v2 }
 0x15a   :  { %v733_v31 = vsub.f32 %v479_v54, %v1495_v38  ;;  %v439_v7 = vmul.f32 0.6931472, %v950_v44  ;;  %v952_v40 = vpop.eup %951 }
 0x15b   :  { %v379_v10 = vpop.xlane.xlu0 %378  ;;  %v762_v25 = vadd.f32 %v761_v60, %v760_v12  ;;  %v675_v3 = vpop.xlane.xlu1 %674  ;;  %v734_v38 = vsub.f32 %v480_v13, %v1497_v17  ;;  %v441_v39 = vmul.f32 0.6931472, %v952_v40 }
 0x15c   :  { %v763_v51 = vsel %vm753_vm0, %v733_v31, 0.0  ;;  %v481_v53 = vadd.f32 %v439_v7, %v1294_v4  ;;  %961 = vlog2.f32 %v379_v10 }
 0x15d   :  { %v954_v46 = vpop.eup %953  ;;  %v764_v41 = vadd.f32 %v763_v51, %v762_v25  ;;  %v765_v22 = vsel %vm753_vm0, %v734_v38, 0.0  ;;  %v482_v63 = vadd.f32 %v441_v39, %v1300_v5 }
 0x15e   :  { %v735_v6 = vsub.f32 %v481_v53, %v1499_v49  ;;  %v443_v52 = vmul.f32 0.6931472, %v954_v46  ;;  %v956_v24 = vpop.eup %955 }
 0x15f   :  { %v383_v19 = vpop.xlane.xlu0 %382  ;;  %v766_v4 = vadd.f32 %v765_v22, %v764_v41  ;;  %v679_v8 = vpop.xlane.xlu1 %678  ;;  %v736_v57 = vsub.f32 %v482_v63, %v1501_v14  ;;  %v445_v16 = vmul.f32 0.6931472, %v956_v24 }
 0x160   :  { %963 = vlog2.f32 %v383_v19  ;;  %v483_v62 = vadd.f32 %v443_v52, %v1575_v48  ;;  %v767_v45 = vsel %vm753_vm0, %v735_v6, 0.0 }
 0x161   :  { %v958_v17 = vpop.eup %957  ;;  %v768_v43 = vadd.f32 %v767_v45, %v766_v4  ;;  %v769_v9 = vsel %vm753_vm0, %v736_v57, 0.0  ;;  %v484_v15 = vadd.f32 %v445_v16, %v1576_v56 }
 0x162   :  { %v447_v29 = vmul.f32 0.6931472, %v958_v17  ;;  %v737_v32 = vsub.f32 %v483_v62, %v1509_v58 }
 0x163   :  { %v387_v1 = vpop.xlane.xlu0 %386  ;;  %v683_v35 = vpop.xlane.xlu1 %682  ;;  %v770_v54 = vadd.f32 %v769_v9, %v768_v43  ;;  %v738_v12 = vsub.f32 %v484_v15, %v1516_v50 }
 0x164   :  { %965 = vlog2.f32 %v387_v1  ;;  %v771_v44 = vsel %vm753_vm0, %v737_v32, 0.0  ;;  %v485_v1 = vadd.f32 %v447_v29, %v1319_v61 }
 0x165   :  { %v960_v49 = vpop.eup %959  ;;  %v772_v7 = vadd.f32 %v771_v44, %v770_v54  ;;  %v773_v51 = vsel %vm753_vm0, %v738_v12, 0.0 }
 0x166   :  { %v449_v27 = vmul.f32 0.6931472, %v960_v49  ;;  %v739_v13 = vsub.f32 %v485_v1, %v675_v3 }
 0x167   :  { %v391_v37 = vpop.xlane.xlu0 %390 }
 0x168   :  { %v486_v31 = vadd.f32 %v449_v27, %v1327_v30  ;;  %v775_v50 = vsel %vm753_vm0, %v739_v13, 0.0  ;;  %v1577_v30 = vld [vmem:[#allocation10_spill] sm:$0xff] }
 0x169   :  { %v962_v5 = vpop.eup %961 }
 0x16a   :  { %v451_v14 = vmul.f32 0.6931472, %v962_v5  ;;  %v740_v61 = vsub.f32 %v486_v31, %v679_v8 }
 0x16b   :  { %v395_v42 = vpop.xlane.xlu0 %394 }
 0x16c   :  { %967 = vlog2.f32 %v395_v42  ;;  %v487_v40 = vadd.f32 %v451_v14, %v1333_v18  ;;  %v774_v42 = vadd.f32 %v773_v51, %v772_v7  ;;  %v777_v18 = vsel %vm753_vm0, %v740_v61, 0.0 }
 0x16d   :  { %969 = vlog2.f32 %v391_v37  ;;  %v964_v59 = vpop.eup %963  ;;  %v687_v37 = vpop.xlane.xlu1 %686 }
 0x16e   :  { %v453_v28 = vmul.f32 0.6931472, %v964_v59  ;;  %v741_v38 = vsub.f32 %v487_v40, %v683_v35  ;;  %v776_v63 = vadd.f32 %v775_v50, %v774_v42 }
 0x16f   :  { %v399_v2 = vpop.xlane.xlu0 %398 }
 0x170   :  { %v488_v53 = vadd.f32 %v453_v28, %v1341_v23  ;;  %v779_v23 = vsel %vm753_vm0, %v741_v38, 0.0  ;;  %v778_v48 = vadd.f32 %v777_v18, %v776_v63 }
 0x171   :  { %v966_v33 = vpop.eup %965  ;;  %v691_v6 = vpop.xlane.xlu1 %690 }
 0x172   :  { %v455_v60 = vmul.f32 0.6931472, %v966_v33  ;;  %v780_v16 = vadd.f32 %v779_v23, %v778_v48 }
 0x173   :  { %v403_v10 = vpop.xlane.xlu0 %402 }
 0x174   :  { %971 = vlog2.f32 %v403_v10  ;;  %v489_v39 = vadd.f32 %v455_v60, %v1577_v30 }
 0x175   :  { %973 = vlog2.f32 %v399_v2  ;;  %v742_v2 = vsub.f32 %v488_v53, %v687_v37  ;;  %v699_v49 = vpop.xlane.xlu1 %698 }
 0x176   :  { %v743_v4 = vsub.f32 %v489_v39, %v691_v6 }
 0x177   :  { %v407_v19 = vpop.xlane.xlu0 %406  ;;  %v781_v45 = vsel %vm753_vm0, %v742_v2, 0.0 }
 0x178   :  { %v783_v29 = vsel %vm753_vm0, %v743_v4, 0.0  ;;  %v782_v35 = vadd.f32 %v781_v45, %v780_v16 }
 0x179   :  { %v968_v46 = vpop.eup %967  ;;  %v707_v54 = vpop.xlane.xlu1 %706 }
 0x17a   :  { %v970_v41 = vpop.eup %969  ;;  %v459_v52 = vmul.f32 0.6931472, %v968_v46  ;;  %v784_v59 = vadd.f32 %v783_v29, %v782_v35 }
 0x17b   :  { %v411_v58 = vpop.xlane.xlu0 %410  ;;  %v457_v24 = vmul.f32 0.6931472, %v970_v41 }
 0x17c   :  { %975 = vlog2.f32 %v411_v58  ;;  %v491_v10 = vadd.f32 %v459_v52, %v1362_v0 }
 0x17d   :  { %977 = vlog2.f32 %v407_v19  ;;  %v490_v32 = vadd.f32 %v457_v24, %v1353_v21  ;;  %v715_v37 = vpop.xlane.xlu1 %714 }
 0x17e   :  { %v745_v9 = vsub.f32 %v491_v10, %v699_v49 }
 0x17f   :  { %v415_v25 = vpop.xlane.xlu0 %414 }
 0x180   :  { %979 = vlog2.f32 %v415_v25  ;;  %v787_v21 = vsel %vm753_vm0, %v745_v9, 0.0 }
 0x181   :  { %v972_v22 = vpop.eup %971  ;;  %v723_v38 = vpop.xlane.xlu1 %722 }
 0x182   :  { %v974_v8 = vpop.eup %973  ;;  %v463_v17 = vmul.f32 0.6931472, %v972_v22 }
 0x183   :  { %v419_v3 = vpop.xlane.xlu0 %418  ;;  %v461_v43 = vmul.f32 0.6931472, %v974_v8 }
 0x184   :  { %981 = vlog2.f32 %v419_v3  ;;  %v493_v56 = vadd.f32 %v463_v17, %v1385_v34 }
 0x185   :  { %v492_v44 = vadd.f32 %v461_v43, %v1372_v47 }
 0x186   :  { %v747_v28 = vsub.f32 %v493_v56, %v707_v54 }
 0x187   :  { %v423_v62 = vpop.xlane.xlu0 %422 }
 0x188   :  { %983 = vlog2.f32 %v423_v62  ;;  %v791_v61 = vsel %vm753_vm0, %v747_v28, 0.0 }
 0x189   :  { %v976_v57 = vpop.eup %975 }
 0x18a   :  { %v978_v5 = vpop.eup %977  ;;  %v467_v27 = vmul.f32 0.6931472, %v976_v57 }
 0x18b   :  { %v695_v19 = vpop.xlane.xlu0 %694  ;;  %v465_v0 = vmul.f32 0.6931472, %v978_v5 }
 0x18c   :  { %v744_v15 = vsub.f32 %v490_v32, %v695_v19  ;;  %v495_v12 = vadd.f32 %v467_v27, %v1407_v11 }
 0x18d   :  { %v980_v1 = vpop.eup %979  ;;  %v494_v25 = vadd.f32 %v465_v0, %v1397_v55 }
 0x18e   :  { %v785_v14 = vsel %vm753_vm0, %v744_v15, 0.0  ;;  %v469_v60 = vmul.f32 0.6931472, %v980_v1  ;;  %v749_v53 = vsub.f32 %v495_v12, %v715_v37 }
 0x18f   :  { %v786_v33 = vadd.f32 %v785_v14, %v784_v59  ;;  %v703_v58 = vpop.xlane.xlu0 %702 }
 0x190   :  { %v746_v31 = vsub.f32 %v492_v44, %v703_v58  ;;  %v496_v41 = vadd.f32 %v469_v60, %v1417_v20  ;;  %v795_v55 = vsel %vm753_vm0, %v749_v53, 0.0 }
 0x191   :  { %v982_v7 = vpop.eup %981  ;;  %v788_v34 = vadd.f32 %v787_v21, %v786_v33 }
 0x192   :  { %v471_v13 = vmul.f32 0.6931472, %v982_v7  ;;  %v789_v40 = vsel %vm753_vm0, %v746_v31, 0.0 }
 0x193   :  { %v790_v51 = vadd.f32 %v789_v40, %v788_v34  ;;  %v711_v47 = vpop.xlane.xlu0 %710 }
 0x194   :  { %v748_v46 = vsub.f32 %v494_v25, %v711_v47  ;;  %v497_v42 = vadd.f32 %v471_v13, %v1427_v26 }
 0x195   :  { %v984_v50 = vpop.eup %983  ;;  %v792_v11 = vadd.f32 %v791_v61, %v790_v51 }
 0x196   :  { %v473_v30 = vmul.f32 0.6931472, %v984_v50  ;;  %v793_v39 = vsel %vm753_vm0, %v748_v46, 0.0  ;;  %v751_v18 = vsub.f32 %v497_v42, %v723_v38 }
 0x197   :  { %v794_v6 = vadd.f32 %v793_v39, %v792_v11  ;;  %v719_v3 = vpop.xlane.xlu0 %718 }
 0x198   :  { %v750_v52 = vsub.f32 %v496_v41, %v719_v3  ;;  %v498_v63 = vadd.f32 %v473_v30, %v1440_v36  ;;  %v799_v23 = vsel %vm753_vm0, %v751_v18, 0.0 }
 0x199   :  { %v796_v2 = vadd.f32 %v795_v55, %v794_v6 }
 0x19a   :  { %v797_v22 = vsel %vm753_vm0, %v750_v52, 0.0 }
 0x19b   :  { %v798_v26 = vadd.f32 %v797_v22, %v796_v2  ;;  %v727_v24 = vpop.xlane.xlu0 %726 }
 0x19c   :  { %v752_v4 = vsub.f32 %v498_v63, %v727_v24 }
 0x19d   :  { %v800_v8 = vadd.f32 %v799_v23, %v798_v26 }
 0x19e   :  { %v801_v48 = vsel %vm753_vm0, %v752_v4, 0.0 }
 0x19f   :  { %v802_v20 = vadd.f32 %v801_v48, %v800_v8 }
 0x1a1   :  { %803 = vadd.xlane.f32.xlu1 %v802_v20 }
 0x22a   :  { %v804_v62 = vpop.xlane.xlu1 %803 }
 0x22b   :  { %v805_v45 = vrot.slane %v804_v62, 4 }
 0x22d   :  { %v806_v17 = vadd.f32 %v805_v45, %v804_v62 }
 0x22f   :  { %v807_v10 = vrot.slane %v806_v17, 2 }
 0x231   :  { %v808_v57 = vadd.f32 %v807_v10, %v806_v17 }
 0x233   :  { %v809_v16 = vrot.slane %v808_v57, 1 }
 0x235   :  { %v810_v49 = vadd.f32 %v809_v16, %v808_v57 }
 0x237   :  { %829 = vpush %v810_v49 }
 0x268   :  { %s830_s14 = spop %829 }
 0x269   :  { %v812_v36 = vstv %s830_s14 }
 0x26a   :  { %813 = vst [vmem:[#allocation5] sm:$0xff] %v812_v36 }
 0x26b   :  { %1016 = shalt.err (!%p1013_p9)
}
 0x26c   :  { %823 = dma.vmem_to_hbm [thread:$0]  %s821_s13, 128, %s1568_s1, [#allocation4]  }
 0x26d   :  { %1027 = dma.done.wait [#allocation4], 128  }
 0x26e   :  { %1028 = vsyncadd [#allocation4], 4294967168 }
 0x26f   :  { %827 = vsyncpa [#allocation3], 1 }
 0x270   :  { %828 = vsyncpa [#allocation4], 1 }

</bundles_post_ra>
